<compile_context>
chip_gen: v5e
topology: v5e:2x2
jax: 0.10.0
libtpu: 0.0.40
codegen_flags: <defaults>
</compile_context>

<pallas_src>
import jax
import jax.numpy as jnp
from jax.experimental import pallas as pl
from jax.experimental.pallas import tpu as pltpu

_EPS = 1e-6  # matches nn.LayerNorm(embed_dim, eps=1e-06)


# --------------------------------------------------------------------------
# Kernel: LayerNorm over the channel (sublane) axis, spatial on the lanes.
# --------------------------------------------------------------------------
def _norm2d_kernel(x_ref, g_ref, b_ref, o_ref):
    # x_ref: (1, C, tile_s) f32 ; g_ref/b_ref: (C, 1) f32
    x = x_ref[0]                                     # (C, tile_s)
    mean = jnp.mean(x, axis=0, keepdims=True)        # (1, tile_s)
    d = x - mean
    var = jnp.mean(d * d, axis=0, keepdims=True)     # biased var (torch LN)
    inv = jax.lax.rsqrt(var + _EPS)                  # EUP rsqrt
    o_ref[0] = d * inv * g_ref[...] + b_ref[...]     # affine, broadcast over lanes


def _pick_spatial_tile(s, c, max_block_bytes=4 * 1024 * 1024):
    """Largest multiple-of-128 divisor of s whose f32 block fits the budget."""
    for cand in (2048, 1024, 512, 256, 128):
        if s % cand == 0 and 4 * c * cand <= max_block_bytes:
            return cand
    return s  # full extent (always legal: block dim == array dim)


def norm2d(x_nchw, gamma, beta):
    """x_nchw: (B, C, H, W) f32; gamma/beta: (C,).  Returns (B, C, H, W) f32.

    Equivalent to the PyTorch Norm2d forward (rearrange -> LayerNorm(C, 1e-6)
    -> rearrange back), with the transposes folded into the reduction axis.
    """
    b, c, h, w = x_nchw.shape
    s = h * w
    tile_s = _pick_spatial_tile(s, c)
    grid = (b, s // tile_s)

    x3 = x_nchw.reshape(b, c, s).astype(jnp.float32)
    g2 = gamma.reshape(c, 1).astype(jnp.float32)
    b2 = beta.reshape(c, 1).astype(jnp.float32)

    n_elem = b * c * s
    cost = pl.CostEstimate(
        flops=7 * n_elem,                         # sub/mul/add for mean+var+affine
        transcendentals=b * s,                    # one rsqrt per pixel
        bytes_accessed=2 * 4 * n_elem + 2 * 4 * c,
    )

    block_bytes = 4 * c * tile_s
    # double-buffered in + out blocks + padded gamma/beta, plus slack
    vmem_limit = int(max(8 * 1024 * 1024, 4 * block_bytes + 4 * 4 * c * 128 + (1 << 20)))

    out = pl.pallas_call(
        _norm2d_kernel,
        out_shape=jax.ShapeDtypeStruct((b, c, s), jnp.float32),
        grid_spec=pltpu.PrefetchScalarGridSpec(
            num_scalar_prefetch=0,
            grid=grid,
            in_specs=[
                pl.BlockSpec((1, c, tile_s), lambda i, j: (i, 0, j)),
                pl.BlockSpec((c, 1), lambda i, j: (0, 0)),
                pl.BlockSpec((c, 1), lambda i, j: (0, 0)),
            ],
            out_specs=pl.BlockSpec((1, c, tile_s), lambda i, j: (i, 0, j)),
        ),
        compiler_params=pltpu.CompilerParams(
            dimension_semantics=("parallel", "parallel"),
            vmem_limit_bytes=vmem_limit,
        ),
        cost_estimate=cost,
    )(x3, g2, b2)
    return out.reshape(b, c, h, w)


# --------------------------------------------------------------------------
# Pure-JAX reference (mirrors the PyTorch forward exactly) for validation.
# --------------------------------------------------------------------------
def _norm2d_ref(x, gamma, beta):
    xt = jnp.transpose(x, (0, 2, 3, 1))                      # b c h w -> b h w c
    mean = jnp.mean(xt, axis=-1, keepdims=True)
    var = jnp.mean((xt - mean) ** 2, axis=-1, keepdims=True)
    y = (xt - mean) * jax.lax.rsqrt(var + _EPS) * gamma + beta
    return jnp.transpose(y, (0, 3, 1, 2))                    # b h w c -> b c h w


if __name__ == "__main__":
    batch, embed_dim, hh, ww = 2, 32, 16, 16
    key = jax.random.PRNGKey(0)
    kx, kg, kb = jax.random.split(key, 3)
    x = jax.random.normal(kx, (batch, embed_dim, hh, ww), dtype=jnp.float32)
    gamma = 1.0 + 0.1 * jax.random.normal(kg, (embed_dim,), dtype=jnp.float32)
    beta = 0.02 * jax.random.normal(kb, (embed_dim,), dtype=jnp.float32)

    fwd = jax.jit(norm2d)
    out = fwd(x, gamma, beta)
    jax.block_until_ready(out)

    assert out.shape == x.shape, (out.shape, x.shape)
    assert out.dtype == jnp.float32
    ref = _norm2d_ref(x, gamma, beta)
    max_err = float(jnp.max(jnp.abs(out - ref)))
    assert jnp.allclose(out, ref, atol=1e-5, rtol=1e-5), max_err
    print("KERNEL_OK")
</pallas_src>

<mosaic_0001>
module attributes {stable_mosaic.version = 11 : i64} {
  func.func @_norm2d_kernel(%arg0: i32, %arg1: i32, %arg2: memref<1x32x256xf32, #tpu.memory_space<vmem>>, %arg3: memref<32x1xf32, #tpu.memory_space<vmem>>, %arg4: memref<32x1xf32, #tpu.memory_space<vmem>>, %arg5: memref<1x32x256xf32, #tpu.memory_space<vmem>>) attributes {dimension_semantics = [#tpu.dimension_semantics<parallel>, #tpu.dimension_semantics<parallel>], iteration_bounds = array<i64: 2, 1>, scalar_prefetch = 0 : i64, scratch_operands = 0 : i64, tpu.core_type = #tpu.core_type<tc>, window_params = [{transform_indices = @transform_0, window_bounds = array<i64: 1, 32, 256>}, {pipeline_mode = #tpu.pipeline_mode<synchronous>, transform_indices = @transform_1, window_bounds = array<i64: 32, 1>}, {pipeline_mode = #tpu.pipeline_mode<synchronous>, transform_indices = @transform_2, window_bounds = array<i64: 32, 1>}, {transform_indices = @transform_3, window_bounds = array<i64: 1, 32, 256>}]} {
    %c0 = arith.constant 0 : index
    %c0_0 = arith.constant 0 : index
    %c0_1 = arith.constant 0 : index
    %0 = vector.load %arg2[%c0, %c0_0, %c0_1] : memref<1x32x256xf32, #tpu.memory_space<vmem>>, vector<1x32x256xf32>
    %1 = vector.shape_cast %0 : vector<1x32x256xf32> to vector<32x256xf32>
    %cst = arith.constant dense<0.000000e+00> : vector<256xf32>
    %2 = vector.multi_reduction <add>, %1, %cst [0] : vector<32x256xf32> to vector<256xf32>
    %3 = vector.shape_cast %2 : vector<256xf32> to vector<1x256xf32>
    %cst_2 = arith.constant 3.200000e+01 : f32
    %4 = vector.broadcast %cst_2 : f32 to vector<1x256xf32>
    %5 = arith.divf %3, %4 : vector<1x256xf32>
    %6 = vector.broadcast %5 : vector<1x256xf32> to vector<32x256xf32>
    %7 = arith.subf %1, %6 : vector<32x256xf32>
    %8 = arith.mulf %7, %7 : vector<32x256xf32>
    %cst_3 = arith.constant dense<0.000000e+00> : vector<256xf32>
    %9 = vector.multi_reduction <add>, %8, %cst_3 [0] : vector<32x256xf32> to vector<256xf32>
    %10 = vector.shape_cast %9 : vector<256xf32> to vector<1x256xf32>
    %cst_4 = arith.constant 3.200000e+01 : f32
    %11 = vector.broadcast %cst_4 : f32 to vector<1x256xf32>
    %12 = arith.divf %10, %11 : vector<1x256xf32>
    %cst_5 = arith.constant 9.99999997E-7 : f32
    %13 = vector.broadcast %cst_5 : f32 to vector<1x256xf32>
    %14 = arith.addf %12, %13 : vector<1x256xf32>
    %15 = math.rsqrt %14 : vector<1x256xf32>
    %16 = vector.broadcast %15 : vector<1x256xf32> to vector<32x256xf32>
    %17 = arith.mulf %7, %16 : vector<32x256xf32>
    %c0_6 = arith.constant 0 : index
    %c0_7 = arith.constant 0 : index
    %18 = vector.load %arg3[%c0_6, %c0_7] : memref<32x1xf32, #tpu.memory_space<vmem>>, vector<32x1xf32>
    %19 = vector.broadcast %18 : vector<32x1xf32> to vector<32x256xf32>
    %20 = arith.mulf %17, %19 : vector<32x256xf32>
    %c0_8 = arith.constant 0 : index
    %c0_9 = arith.constant 0 : index
    %21 = vector.load %arg4[%c0_8, %c0_9] : memref<32x1xf32, #tpu.memory_space<vmem>>, vector<32x1xf32>
    %22 = vector.broadcast %21 : vector<32x1xf32> to vector<32x256xf32>
    %23 = arith.addf %20, %22 : vector<32x256xf32>
    %c0_10 = arith.constant 0 : index
    %c0_11 = arith.constant 0 : index
    %c0_12 = arith.constant 0 : index
    %24 = vector.load %arg5[%c0_10, %c0_11, %c0_12] : memref<1x32x256xf32, #tpu.memory_space<vmem>>, vector<1x32x256xf32>
    %25 = vector.shape_cast %24 : vector<1x32x256xf32> to vector<32x256xf32>
    %26 = vector.shape_cast %23 : vector<32x256xf32> to vector<1x32x256xf32>
    tpu.vector_store %arg5[%c0_10, %c0_11, %c0_12], %26 {strides = array<i32>} : memref<1x32x256xf32, #tpu.memory_space<vmem>>, vector<1x32x256xf32>,
    return
  }
  func.func @transform_0(%arg0: i32, %arg1: i32) -> (i32, i32, i32) {
    %c0_i32 = arith.constant 0 : i32
    %c0_i32_0 = arith.constant 0 : i32
    return %arg0, %c0_i32, %arg1 : i32, i32, i32
  }
  func.func @transform_1(%arg0: i32, %arg1: i32) -> (i32, i32) {
    %c0_i32 = arith.constant 0 : i32
    %c0_i32_0 = arith.constant 0 : i32
    %c0_i32_1 = arith.constant 0 : i32
    return %c0_i32, %c0_i32_0 : i32, i32
  }
  func.func @transform_2(%arg0: i32, %arg1: i32) -> (i32, i32) {
    %c0_i32 = arith.constant 0 : i32
    %c0_i32_0 = arith.constant 0 : i32
    %c0_i32_1 = arith.constant 0 : i32
    return %c0_i32, %c0_i32_0 : i32, i32
  }
  func.func @transform_3(%arg0: i32, %arg1: i32) -> (i32, i32, i32) {
    %c0_i32 = arith.constant 0 : i32
    %c0_i32_0 = arith.constant 0 : i32
    return %arg0, %c0_i32, %arg1 : i32, i32, i32
  }
}

</mosaic_0001>

<bundles_post_ra>
// kernel: norm2d.1
= control target key start
LH: loop header
LB: loop body
LE: loop exit
PB: predicated region body
PF: predicated region fallthrough
CT: control target
= control target key end

     0   :  { %s564_s12 = smov 0   ;;  %s566_s13 = smov 0   ;;  %s668_s0 = inlined_call_operand.vmem [shape: f32[2,32,256], index: 0, kind: input, shape index: {}]   ;;  %s669_s1 = inlined_call_operand.vmem [shape: f32[32,1], index: 1, kind: input, shape index: {}]   ;;  %s670_s2 = inlined_call_operand.vmem [shape: f32[32,1], index: 2, kind: input, shape index: {}]   ;;  %s671_s3 = inlined_call_operand.vmem [shape: f32[2,32,256], index: 3, kind: output, shape index: {}]  }
   0x1   :  { %s568_s14 = smov 0  }
   0x2 LB: > { %s25_s15 = sadd.s32 1, %s536_s13  ;;  %p474_p0 = scmp.ge.s32.totalorder %s540_s14, 1  ;;  %s540_s14 = sphi %s568_s14, %s13_s14   ;;  %s536_s13 = sphi %s566_s13, %s673_s13   ;;  %s532_s12 = sphi %s564_s12, %s672_s12  }
   0x3   : > { %p27_p1 = scmp.ge.s32.totalorder %s25_s15, 2  ;;  %p158_p2 = scmp.lt.s32.totalorder %s540_s14, 3 }
   0x5   : > { %s675_s15 = smov (%p27_p1, %s25_s15), 0  ;;  %p159_p3 = pnand %p474_p0, %p158_p2 }
   0x6   : > { %p191_p4 = scmp.lt.s32.totalorder (!%p159_p3), %s532_s12, 1 }
   0x7   : > { %162 = sbr.rel (%p159_p3) target bundleno = 151 (0x97), region = 32 }
   0xc   : > { %v313_v0 = vld [vmem:[%s669_s1 + $0x10] sm:$0xff]  ;;  %v311_v1 = vld [vmem:[%s669_s1] sm:$0xff]  ;;  %v542_v2 = vmov 0   ;;  %v314_v4 = vld [vmem:[%s669_s1 + $0x18] sm:$0xff]  ;;  %s677_s12 = smov (!%p191_p4, %s532_s12), 1  ;;  %v543_v18 = vmov 32.0  }
   0xd   : > { %510 = vset.pattern.permute.xlu1 %v542_v2  ;;  %509 = vset.pattern.permute.xlu0 %v542_v2  ;;  %v343_v3 = vld [vmem:[%s670_s2] sm:$0xff]  ;;  %v312_v5 = vld [vmem:[%s669_s1 + $0x8] sm:$0xff]  ;;  %s481_s28 = sshll.u32 %s677_s12, 6  ;;  %v346_v7 = vld [vmem:[%s670_s2 + $0x18] sm:$0xff]  ;;  %512 = vrcp.f32 %v543_v18 }
   0xe   : > { %327 = vperm.xlu1 %510, %v313_v0   ;;  %317 = vperm.xlu0 %509, %v311_v1   ;;  %v344_v6 = vld [vmem:[%s670_s2 + $0x8] sm:$0xff]  ;;  %v345_v8 = vld [vmem:[%s670_s2 + $0x10] sm:$0xff]  ;;  %s198_s8 = scalar_lea.vmem %s668_s0, %s481_s28  ;;  %s643_s11 = scalar_lea.vmem %s671_s3, %s481_s28 }
   0xf   : > { %511 = vset.pattern.permute.xlu2 %v542_v2  ;;  %v210_v9 = vld [vmem:[%s198_s8] sm:$0xff]  ;;  %v211_v10 = vld [vmem:[%s198_s8 + $0x8] sm:$0xff]  ;;  %v212_v11 = vld [vmem:[%s198_s8 + $0x10] sm:$0xff] }
  0x10   : > { %349 = vperm.xlu2 %511, %v343_v3   ;;  %v213_v12 = vld [vmem:[%s198_s8 + $0x18] sm:$0xff]  ;;  %v218_v13 = vadd.f32 %v212_v11, %v210_v9  ;;  %v214_v14 = vld [vmem:[%s198_s8 + $0x20] sm:$0xff]  ;;  %v215_v15 = vld [vmem:[%s198_s8 + $0x28] sm:$0xff] }
  0x11   : > { %v227_v16 = vadd.f32 %v213_v12, %v211_v10  ;;  %v216_v19 = vld [vmem:[%s198_s8 + $0x30] sm:$0xff]  ;;  %v217_v20 = vld [vmem:[%s198_s8 + $0x38] sm:$0xff] }
  0x12   : > { %v219_v17 = vadd.f32 %v218_v13, %v214_v14 }
  0x13   : > { %v228_v21 = vadd.f32 %v227_v16, %v215_v15  ;;  %v513_v26 = vpop.eup %512 }
  0x14   : > { %v220_v22 = vadd.f32 %v219_v17, %v216_v19  ;;  %v237_v29 = vmul.f32 32.0, %v513_v26  ;;  %vm241_vm0 = vweird.f32 %v513_v26 }
  0x15   : > { %v229_v23 = vadd.f32 %v228_v21, %v217_v20 }
  0x16   : > { %332 = vperm.xlu1 %510, %v314_v4   ;;  %322 = vperm.xlu0 %509, %v312_v5   ;;  %v221_v24 = vrot.slane %v220_v22, 4  ;;  %v238_v32 = vsub.f32 1.0, %v237_v29 }
  0x17   : > { %v230_v25 = vrot.slane %v229_v23, 4 }
  0x18   : > { %354 = vperm.xlu2 %511, %v344_v6   ;;  %v222_v27 = vadd.f32 %v221_v24, %v220_v22  ;;  %v239_v35 = vmul.f32 %v513_v26, %v238_v32 }
  0x19   : > { %v231_v28 = vadd.f32 %v230_v25, %v229_v23 }
  0x1a   : > { %v223_v30 = vrot.slane %v222_v27, 2  ;;  %v240_v38 = vadd.f32 %v513_v26, %v239_v35 }
  0x1b   : > { %v232_v31 = vrot.slane %v231_v28, 2 }
  0x1c   : > { %v224_v33 = vadd.f32 %v223_v30, %v222_v27  ;;  %v242_v41 = vsel %vm241_vm0, %v513_v26, %v240_v38 }
  0x1d   : > { %v233_v34 = vadd.f32 %v232_v31, %v231_v28 }
  0x1e   : > { %364 = vperm.xlu1 %510, %v346_v7   ;;  %359 = vperm.xlu0 %509, %v345_v8   ;;  %v225_v36 = vrot.slane %v224_v33, 1 }
  0x1f   : > { %v234_v37 = vrot.slane %v233_v34, 1 }
  0x20   : > { %v226_v39 = vadd.f32 %v225_v36, %v224_v33 }
  0x21   : > { %v235_v40 = vadd.f32 %v234_v37, %v233_v34 }
  0x22   : > { %v243_v42 = vmul.f32 %v242_v41, %v226_v39 }
  0x23   : > { %v244_v43 = vmul.f32 %v242_v41, %v235_v40 }
  0x24   : > { %v245_v44 = vsub.f32 %v210_v9, %v243_v42  ;;  %v614_v45 = vsub.f32 %v212_v11, %v243_v42  ;;  %v618_v48 = vsub.f32 %v214_v14, %v243_v42  ;;  %v626_v54 = vsub.f32 %v216_v19, %v243_v42 }
  0x25   : > { %v246_v46 = vsub.f32 %v211_v10, %v244_v43  ;;  %v616_v47 = vsub.f32 %v213_v12, %v244_v43  ;;  %v620_v49 = vsub.f32 %v215_v15, %v244_v43  ;;  %v628_v55 = vsub.f32 %v217_v20, %v244_v43 }
  0x26   : > { %v253_v50 = vmul.f32 %v245_v44, %v245_v44  ;;  %v255_v51 = vmul.f32 %v614_v45, %v614_v45  ;;  %v257_v56 = vmul.f32 %v618_v48, %v618_v48  ;;  %v259_v60 = vmul.f32 %v626_v54, %v626_v54 }
  0x27   : > { %v254_v52 = vmul.f32 %v246_v46, %v246_v46  ;;  %v256_v53 = vmul.f32 %v616_v47, %v616_v47  ;;  %v258_v57 = vmul.f32 %v620_v49, %v620_v49  ;;  %v260_v61 = vmul.f32 %v628_v55, %v628_v55 }
  0x28   : > { %v261_v58 = vadd.f32 %v255_v51, %v253_v50 }
  0x29   : > { %v270_v59 = vadd.f32 %v256_v53, %v254_v52 }
  0x2a   : > { %v262_v62 = vadd.f32 %v261_v58, %v257_v56 }
  0x2b   : > { %v271_v63 = vadd.f32 %v270_v59, %v258_v57 }
  0x2c   : > { %v263_v0 = vadd.f32 %v262_v62, %v259_v60 }
  0x2d   : > { %v272_v1 = vadd.f32 %v271_v63, %v260_v61 }
  0x2e   : > { %v264_v2 = vrot.slane %v263_v0, 4 }
  0x2f   : > { %v273_v3 = vrot.slane %v272_v1, 4 }
  0x30   : > { %v265_v4 = vadd.f32 %v264_v2, %v263_v0 }
  0x31   : > { %v274_v5 = vadd.f32 %v273_v3, %v272_v1 }
  0x32   : > { %v266_v6 = vrot.slane %v265_v4, 2 }
  0x33   : > { %v275_v7 = vrot.slane %v274_v5, 2 }
  0x34   : > { %v267_v8 = vadd.f32 %v266_v6, %v265_v4 }
  0x35   : > { %v276_v9 = vadd.f32 %v275_v7, %v274_v5 }
  0x36   : > { %v268_v10 = vrot.slane %v267_v8, 1 }
  0x37   : > { %v277_v11 = vrot.slane %v276_v9, 1 }
  0x38   : > { %v269_v12 = vadd.f32 %v268_v10, %v267_v8 }
  0x39   : > { %v278_v13 = vadd.f32 %v277_v11, %v276_v9 }
  0x3a   : > { %v279_v14 = vmul.f32 %v269_v12, %v242_v41 }
  0x3b   : > { %v280_v15 = vmul.f32 %v278_v13, %v242_v41 }
  0x3c   : > { %v281_v16 = vadd.f32 1e-06, %v279_v14 }
  0x3d   : > { %v282_v17 = vadd.f32 1e-06, %v280_v15 }
  0x3e   : > { %514 = vrsqrt.f32 %v281_v16  ;;  %vm289_vm1 = vweird.f32 %v281_v16 }
  0x3f   : > { %516 = vrsqrt.f32 %v282_v17  ;;  %vm299_vm3 = vweird.f32 %v282_v17 }
  0x44   : > { %v515_v18 = vpop.eup %514 }
  0x45   : > { %v517_v19 = vpop.eup %516  ;;  %v284_v20 = vmul.f32 %v515_v18, %v281_v16  ;;  %vm290_vm2 = vweird.f32 %v515_v18 }
  0x46   : > { %v294_v21 = vmul.f32 %v517_v19, %v282_v17  ;;  %vm300_vm4 = vweird.f32 %v517_v19  ;;  %vm291_vm5 = vmor %vm289_vm1, %vm290_vm2 }
  0x47   : > { %v285_v22 = vmul.f32 %v515_v18, %v284_v20  ;;  %vm301_vm6 = vmor %vm299_vm3, %vm300_vm4 }
  0x48   : > { %v295_v23 = vmul.f32 %v517_v19, %v294_v21 }
  0x49   : > { %v286_v24 = vmul.f32 0.5, %v285_v22 }
  0x4a   : > { %v296_v25 = vmul.f32 0.5, %v295_v23 }
  0x4b   : > { %v287_v26 = vsub.f32 1.5, %v286_v24 }
  0x4c   : > { %v297_v27 = vsub.f32 1.5, %v296_v25 }
  0x4d   : > { %v288_v28 = vmul.f32 %v515_v18, %v287_v26 }
  0x4e   : > { %v298_v29 = vmul.f32 %v517_v19, %v297_v27 }
  0x4f   : > { %v292_v30 = vsel %vm291_vm5, %v515_v18, %v288_v28 }
  0x50   : > { %v302_v31 = vsel %vm301_vm6, %v517_v19, %v298_v29  ;;  %v303_v32 = vmul.f32 %v292_v30, %v245_v44  ;;  %v305_v41 = vmul.f32 %v292_v30, %v614_v45  ;;  %v307_v51 = vmul.f32 %v292_v30, %v618_v48 }
  0x51   : > { %v304_v33 = vmul.f32 %v302_v31, %v246_v46  ;;  %v306_v42 = vmul.f32 %v302_v31, %v616_v47  ;;  %v309_v53 = vmul.f32 %v292_v30, %v626_v54  ;;  %v310_v56 = vmul.f32 %v302_v31, %v628_v55 }
  0x52   : > { %v308_v45 = vmul.f32 %v302_v31, %v620_v49 }
  0x6a   : > { %v350_v34 = vpop.permute.xlu2 %349 }
  0x72   : > { %v355_v52 = vpop.permute.xlu2 %354 }
  0x80   : > { %v328_v35 = vpop.permute.xlu1 %327  ;;  %v318_v36 = vpop.permute.xlu0 %317 }
  0x81   : > { %v335_v37 = vmul.f32 %v318_v36, %v303_v32  ;;  %v336_v38 = vmul.f32 %v318_v36, %v304_v33  ;;  %v339_v47 = vmul.f32 %v328_v35, %v307_v51  ;;  %v340_v61 = vmul.f32 %v328_v35, %v308_v45 }
  0x83   : > { %v367_v39 = vadd.f32 %v350_v34, %v335_v37  ;;  %v368_v40 = vadd.f32 %v350_v34, %v336_v38 }
  0x85   : > { %375 = vst [vmem:[%s643_s11] sm:$0xff] %v367_v39 }
  0x86   : > { %376 = vst [vmem:[%s643_s11 + $0x8] sm:$0xff] %v368_v40 }
  0x88   : > { %v333_v43 = vpop.permute.xlu1 %332  ;;  %v323_v44 = vpop.permute.xlu0 %322 }
  0x89   : > { %v337_v46 = vmul.f32 %v323_v44, %v305_v41  ;;  %v338_v50 = vmul.f32 %v323_v44, %v306_v42  ;;  %v341_v59 = vmul.f32 %v333_v43, %v309_v53  ;;  %v342_v60 = vmul.f32 %v333_v43, %v310_v56 }
  0x8b   : > { %v369_v57 = vadd.f32 %v355_v52, %v337_v46  ;;  %v370_v58 = vadd.f32 %v355_v52, %v338_v50 }
  0x8d   : > { %377 = vst [vmem:[%s643_s11 + $0x10] sm:$0xff] %v369_v57 }
  0x8e   : > { %378 = vst [vmem:[%s643_s11 + $0x18] sm:$0xff] %v370_v58 }
  0x90   : > { %v365_v48 = vpop.permute.xlu1 %364  ;;  %v360_v62 = vpop.permute.xlu0 %359 }
  0x91   : > { %v373_v63 = vadd.f32 %v365_v48, %v341_v59  ;;  %v374_v54 = vadd.f32 %v365_v48, %v342_v60  ;;  %v371_v0 = vadd.f32 %v360_v62, %v339_v47  ;;  %v372_v55 = vadd.f32 %v360_v62, %v340_v61 }
  0x93   : > { %381 = vst [vmem:[%s643_s11 + $0x30] sm:$0xff] %v373_v63 }
  0x94   : > { %382 = vst [vmem:[%s643_s11 + $0x38] sm:$0xff] %v374_v54 }
  0x95   : > { %379 = vst [vmem:[%s643_s11 + $0x20] sm:$0xff] %v371_v0 }
  0x96   : > { %380 = vst [vmem:[%s643_s11 + $0x28] sm:$0xff] %v372_v55 }
  0x97 PF: > { %s13_s14 = sadd.s32 1, %s540_s14   ;;  %s672_s12 = smov %s536_s13 }
  0x98   : > { %p10_p5 = scmp.ge.s32.totalorder %s13_s14, 4   ;;  %s673_s13 = smov %s675_s15 }
  0x9a   :  { %12 = sbr.rel (!%p10_p5) target bundleno = 2 (0x2), region = 62 }

</bundles_post_ra>
